<compile_context>
chip_gen: v7x
topology: tpu7x:2x2x1
jax: 0.10.0
libtpu: 0.0.40
codegen_flags: <defaults>
</compile_context>

<pallas_src>
import jax
import jax.numpy as jnp
from jax import lax
from jax.experimental import pallas as pl
from jax.experimental.pallas import tpu as pltpu


def _round_up(x, n):
    return ((x + n - 1) // n) * n


def _cdiv(a, b):
    return -(-a // b)


# ---------------------------------------------------------------------------
# Per-generation configuration (VMEM budgets / limits, row-tile targets).
# ---------------------------------------------------------------------------
def _tpu_config():
    """Returns (vmem_budget_bytes, vmem_limit_bytes, two_cores, kind)."""
    try:
        kind = jax.devices()[0].device_kind.lower()
    except Exception:  # pragma: no cover - defensive
        kind = ""
    if "v7" in kind:
        # 64 MiB physical VMEM per TensorCore; leave headroom for compiler scratch.
        return 48 * 1024 * 1024, 56 * 1024 * 1024, True, kind
    if "v6" in kind or "v5" in kind:
        # 128 MiB physical VMEM.
        return 96 * 1024 * 1024, 104 * 1024 * 1024, False, kind
    # Unknown generation: stay conservative.
    return 40 * 1024 * 1024, 48 * 1024 * 1024, False, kind


def _tm_target(kind, x_itemsize):
    if "v7" in kind:
        return 512
    if "v6" in kind:
        return 1024
    if "v5" in kind:
        # v5e bf16 crossover already met at 256; f32 needs ~512.
        return 256 if x_itemsize <= 2 else 512
    return 512


def _pick_tn(hidden, dim_p, w_itemsize, vmem_budget):
    """Hidden tile: multiple of 128, <=512, weight tiles capped to ~1/3 of budget."""
    tn = min(512, _round_up(hidden, 128))
    # W1 + W2 tiles, double-buffered: 2 * 2 * dim_p * tn * w_itemsize.
    while tn > 128 and 4 * dim_p * tn * w_itemsize > vmem_budget // 3:
        tn -= 128
    return tn


def _pick_tm(m, dim_p, tn, x_itemsize, w_itemsize, tm_target, tm_align,
             two_cores, vmem_budget):
    tm = min(tm_target, _round_up(m, tm_align))

    # v7x megacore: keep at least 2 row tiles so both TensorCores get work.
    if two_cores:
        while _cdiv(m, tm) < 2 and tm > tm_align:
            tm = max(tm_align, _round_up(tm // 2, tm_align))

    def vmem_bytes(tm_):
        return (2 * tm_ * dim_p * x_itemsize          # x blocks (double-buffered)
                + 2 * tm_ * dim_p * x_itemsize        # out blocks (double-buffered)
                + 4 * dim_p * tn * w_itemsize         # W1 + W2 blocks (double-buffered)
                + 2 * tn * w_itemsize                 # b1 blocks
                + 2 * dim_p * w_itemsize              # b2 blocks
                + tm_ * dim_p * 4                     # f32 accumulator scratch
                + tm_ * tn * (4 + w_itemsize))        # GELU intermediate + cast copy

    while tm > tm_align and vmem_bytes(tm) > vmem_budget:
        tm = max(tm_align, _round_up(tm // 2, tm_align))
    return tm


# ---------------------------------------------------------------------------
# Kernel.
# ---------------------------------------------------------------------------
def _ffn_kernel(x_ref, w1_ref, b1_ref, w2_ref, b2_ref, o_ref, acc_ref):
    # x_ref:  (tm, dim_p)   row tile of the flattened input
    # w1_ref: (dim_p, tn)   hidden tile of W1
    # b1_ref: (1, tn)
    # w2_ref: (tn, dim_p)   hidden tile of W2
    # b2_ref: (1, dim_p)    grid-constant
    # o_ref:  (tm, dim_p)
    # acc_ref:(tm, dim_p)   f32 accumulator, resident across the hidden axis
    k = pl.program_id(1)

    # Linear 1 (MXU, native operand dtype, f32 accumulation).
    h = jnp.dot(x_ref[...], w1_ref[...], preferred_element_type=jnp.float32)
    h = h + b1_ref[...].astype(jnp.float32)

    # Exact (erf-based) GELU — matches torch.nn.GELU() default — in f32.
    h = 0.5 * h * (1.0 + lax.erf(h * jnp.float32(0.7071067811865476)))

    # Dropout(p=0.0) -> identity.

    # Linear 2 partial product for this hidden tile; accumulate over k.
    partial = jnp.dot(h.astype(w2_ref.dtype), w2_ref[...],
                      preferred_element_type=jnp.float32)

    @pl.when(k == 0)
    def _():
        acc_ref[...] = partial          # write directly; no memset + re-read

    @pl.when(k > 0)
    def _():
        acc_ref[...] += partial

    # Dropout(p=0.0) -> identity.
    @pl.when(k == pl.num_programs(1) - 1)
    def _():
        o_ref[...] = (acc_ref[...] + b2_ref[...].astype(jnp.float32)).astype(o_ref.dtype)


# ---------------------------------------------------------------------------
# Wrapper: parameters padded once (hoisted); only x padded per call.
# ---------------------------------------------------------------------------
def make_feed_forward(w1, b1, w2, b2):
    """w1: [dim, hidden], b1: [hidden], w2: [hidden, dim], b2: [dim].

    Pads the parameters once and returns a jitted forward fn x -> [..., dim].
    """
    dim, hidden = w1.shape
    w_itemsize = jnp.dtype(w1.dtype).itemsize
    vmem_budget, vmem_limit, two_cores, kind = _tpu_config()

    dim_p = _round_up(dim, 128)
    tn = _pick_tn(hidden, dim_p, w_itemsize, vmem_budget)
    hidden_p = _round_up(hidden, tn)

    # Zero padding is exact for this FFN (GELU(0)=0; padded W2 rows/cols are 0).
    # Done once here — not on every forward call.
    w1_p = jnp.pad(w1, ((0, dim_p - dim), (0, hidden_p - hidden)))
    b1_p = jnp.pad(b1.reshape(1, hidden), ((0, 0), (0, hidden_p - hidden)))
    w2_p = jnp.pad(w2, ((0, hidden_p - hidden), (0, dim_p - dim)))
    b2_p = jnp.pad(b2.reshape(1, dim), ((0, 0), (0, dim_p - dim)))

    @jax.jit
    def _fwd(x, w1p, b1p, w2p, b2p):
        orig_shape = x.shape
        x2d = x.reshape(-1, dim)
        m = x2d.shape[0]
        x_itemsize = jnp.dtype(x.dtype).itemsize

        # Dtype-aware sublane alignment for the row tile (8 f32 / 16 bf16 / 32 int8).
        tm_align = 8 * max(1, 4 // x_itemsize)
        tm = _pick_tm(m, dim_p, tn, x_itemsize, w_itemsize,
                      _tm_target(kind, x_itemsize), tm_align,
                      two_cores, vmem_budget)
        m_p = _round_up(m, tm)

        # Only the activations get padded per call.
        x_pad = jnp.pad(x2d, ((0, m_p - m), (0, dim_p - dim)))

        grid = (m_p // tm, hidden_p // tn)
        num_row_tiles = grid[0]

        cost = pl.CostEstimate(
            flops=4 * m_p * dim_p * hidden_p,
            transcendentals=m_p * hidden_p,
            bytes_accessed=(
                2 * m_p * dim_p * x_itemsize                           # x read + out write
                + num_row_tiles * 2 * dim_p * hidden_p * w_itemsize    # W1+W2 per row tile
                + num_row_tiles * (hidden_p + dim_p) * w_itemsize),    # biases per row tile
        )

        out = pl.pallas_call(
            _ffn_kernel,
            out_shape=jax.ShapeDtypeStruct((m_p, dim_p), x.dtype),
            grid_spec=pltpu.PrefetchScalarGridSpec(
                num_scalar_prefetch=0,
                grid=grid,
                in_specs=[
                    pl.BlockSpec((tm, dim_p), lambda i, k: (i, 0)),   # x row tile
                    pl.BlockSpec((dim_p, tn), lambda i, k: (0, k)),   # W1 hidden tile
                    pl.BlockSpec((1, tn), lambda i, k: (0, k)),       # b1 hidden tile
                    pl.BlockSpec((tn, dim_p), lambda i, k: (k, 0)),   # W2 hidden tile
                    pl.BlockSpec((1, dim_p), lambda i, k: (0, 0)),    # b2 (grid-constant)
                ],
                out_specs=pl.BlockSpec((tm, dim_p), lambda i, k: (i, 0)),
                scratch_shapes=[pltpu.VMEM((tm, dim_p), jnp.float32)],
            ),
            compiler_params=pltpu.CompilerParams(
                dimension_semantics=("parallel", "arbitrary"),
                vmem_limit_bytes=vmem_limit,
            ),
            cost_estimate=cost,
        )(x_pad, w1p, b1p, w2p, b2p)

        return out[:m, :dim].reshape(orig_shape)

    def forward(x):
        return _fwd(x, w1_p, b1_p, w2_p, b2_p)

    return forward


if __name__ == "__main__":
    # Small shapes consistent with the module: tokens of width `dim`.
    batch, seq, dim, hidden_dim = 2, 8, 32, 64

    key = jax.random.PRNGKey(0)
    kx, kw1, kb1, kw2, kb2 = jax.random.split(key, 5)

    x = jax.random.normal(kx, (batch, seq, dim), dtype=jnp.float32)

    # Parameters stored as [in, out] (transposed vs. torch nn.Linear.weight).
    w1 = jax.random.normal(kw1, (dim, hidden_dim), dtype=jnp.float32) * (1.0 / jnp.sqrt(dim))
    b1 = jax.random.normal(kb1, (hidden_dim,), dtype=jnp.float32) * 0.01
    w2 = jax.random.normal(kw2, (hidden_dim, dim), dtype=jnp.float32) * (1.0 / jnp.sqrt(hidden_dim))
    b2 = jax.random.normal(kb2, (dim,), dtype=jnp.float32) * 0.01

    feed_forward = make_feed_forward(w1, b1, w2, b2)
    out = feed_forward(x)
    jax.block_until_ready(out)

    # Pure-JAX reference (exact GELU, dropout=0 -> identity).
    h_ref = x.reshape(-1, dim) @ w1 + b1
    h_ref = 0.5 * h_ref * (1.0 + lax.erf(h_ref / jnp.sqrt(2.0)))
    ref = (h_ref @ w2 + b2).reshape(batch, seq, dim)
    assert out.shape == ref.shape
    assert jnp.allclose(out, ref, atol=1e-3, rtol=1e-3), "mismatch vs reference"

    print("KERNEL_OK")
</pallas_src>

<mosaic_0001>
module attributes {stable_mosaic.version = 11 : i64} {
  func.func @_ffn_kernel(%arg0: i32, %arg1: i32, %arg2: memref<16x128xf32, #tpu.memory_space<vmem>>, %arg3: memref<128x128xf32, #tpu.memory_space<vmem>>, %arg4: memref<1x128xf32, #tpu.memory_space<vmem>>, %arg5: memref<128x128xf32, #tpu.memory_space<vmem>>, %arg6: memref<1x128xf32, #tpu.memory_space<vmem>>, %arg7: memref<16x128xf32, #tpu.memory_space<vmem>>, %arg8: memref<16x128xf32, #tpu.memory_space<vmem>>) attributes {dimension_semantics = [#tpu.dimension_semantics<parallel>, #tpu.dimension_semantics<arbitrary>], iteration_bounds = array<i64: 1, 1>, scalar_prefetch = 0 : i64, scratch_operands = 1 : i64, tpu.core_type = #tpu.core_type<tc>, window_params = [{transform_indices = @transform_0, window_bounds = array<i64: 16, 128>}, {transform_indices = @transform_1, window_bounds = array<i64: 128, 128>}, {transform_indices = @transform_2, window_bounds = array<i64: 1, 128>}, {transform_indices = @transform_3, window_bounds = array<i64: 128, 128>}, {pipeline_mode = #tpu.pipeline_mode<synchronous>, transform_indices = @transform_4, window_bounds = array<i64: 1, 128>}, {transform_indices = @transform_5, window_bounds = array<i64: 16, 128>}]} {
    %c0 = arith.constant 0 : index
    %c0_0 = arith.constant 0 : index
    %0 = vector.load %arg2[%c0, %c0_0] : memref<16x128xf32, #tpu.memory_space<vmem>>, vector<16x128xf32>
    %c0_1 = arith.constant 0 : index
    %c0_2 = arith.constant 0 : index
    %1 = vector.load %arg3[%c0_1, %c0_2] : memref<128x128xf32, #tpu.memory_space<vmem>>, vector<128x128xf32>
    %cst = arith.constant dense<0.000000e+00> : vector<16x128xf32>
    %2 = tpu.matmul %0, %1, %cst {dimension_numbers = #tpu.dot_dimension_numbers<[1], [0], [0], [1], [0, 0, 1, 1], [], []>} : vector<16x128xf32>, vector<128x128xf32>, vector<16x128xf32> -> vector<16x128xf32>
    %c0_3 = arith.constant 0 : index
    %c0_4 = arith.constant 0 : index
    %3 = vector.load %arg4[%c0_3, %c0_4] : memref<1x128xf32, #tpu.memory_space<vmem>>, vector<1x128xf32>
    %4 = vector.broadcast %3 : vector<1x128xf32> to vector<16x128xf32>
    %5 = arith.addf %2, %4 : vector<16x128xf32>
    %cst_5 = arith.constant 5.000000e-01 : f32
    %6 = vector.broadcast %cst_5 : f32 to vector<16x128xf32>
    %7 = arith.mulf %6, %5 : vector<16x128xf32>
    %cst_6 = arith.constant 0.707106769 : f32
    %8 = vector.broadcast %cst_6 : f32 to vector<16x128xf32>
    %9 = arith.mulf %5, %8 : vector<16x128xf32>
    %10 = math.erf %9 : vector<16x128xf32>
    %cst_7 = arith.constant 1.000000e+00 : f32
    %11 = vector.broadcast %cst_7 : f32 to vector<16x128xf32>
    %12 = arith.addf %11, %10 : vector<16x128xf32>
    %13 = arith.mulf %7, %12 : vector<16x128xf32>
    %c0_8 = arith.constant 0 : index
    %c0_9 = arith.constant 0 : index
    %14 = vector.load %arg5[%c0_8, %c0_9] : memref<128x128xf32, #tpu.memory_space<vmem>>, vector<128x128xf32>
    %cst_10 = arith.constant dense<0.000000e+00> : vector<16x128xf32>
    %15 = tpu.matmul %13, %14, %cst_10 {dimension_numbers = #tpu.dot_dimension_numbers<[1], [0], [0], [1], [0, 0, 1, 1], [], []>} : vector<16x128xf32>, vector<128x128xf32>, vector<16x128xf32> -> vector<16x128xf32>
    %c0_i32 = arith.constant 0 : i32
    %16 = arith.cmpi eq, %arg1, %c0_i32 : i32
    %17 = arith.extui %16 : i1 to i32
    %c0_i32_11 = arith.constant 0 : i32
    %18 = arith.cmpi ne, %17, %c0_i32_11 : i32
    scf.if %18 {
      %c0_16 = arith.constant 0 : index
      %c0_17 = arith.constant 0 : index
      %25 = vector.load %arg8[%c0_16, %c0_17] : memref<16x128xf32, #tpu.memory_space<vmem>>, vector<16x128xf32>
      tpu.vector_store %arg8[%c0_16, %c0_17], %15 {strides = array<i32>} : memref<16x128xf32, #tpu.memory_space<vmem>>, vector<16x128xf32>,
    } else {
    }
    %c0_i32_12 = arith.constant 0 : i32
    %19 = arith.cmpi sgt, %arg1, %c0_i32_12 : i32
    %20 = arith.extui %19 : i1 to i32
    %c0_i32_13 = arith.constant 0 : i32
    %21 = arith.cmpi ne, %20, %c0_i32_13 : i32
    scf.if %21 {
      %c0_16 = arith.constant 0 : index
      %c0_17 = arith.constant 0 : index
      %25 = vector.load %arg8[%c0_16, %c0_17] : memref<16x128xf32, #tpu.memory_space<vmem>>, vector<16x128xf32>
      %26 = arith.addf %25, %15 : vector<16x128xf32>
      %c0_18 = arith.constant 0 : index
      %c0_19 = arith.constant 0 : index
      %27 = vector.load %arg8[%c0_18, %c0_19] : memref<16x128xf32, #tpu.memory_space<vmem>>, vector<16x128xf32>
      tpu.vector_store %arg8[%c0_18, %c0_19], %26 {strides = array<i32>} : memref<16x128xf32, #tpu.memory_space<vmem>>, vector<16x128xf32>,
    } else {
    }
    %c0_i32_14 = arith.constant 0 : i32
    %22 = arith.cmpi eq, %arg1, %c0_i32_14 : i32
    %23 = arith.extui %22 : i1 to i32
    %c0_i32_15 = arith.constant 0 : i32
    %24 = arith.cmpi ne, %23, %c0_i32_15 : i32
    scf.if %24 {
      %c0_16 = arith.constant 0 : index
      %c0_17 = arith.constant 0 : index
      %25 = vector.load %arg8[%c0_16, %c0_17] : memref<16x128xf32, #tpu.memory_space<vmem>>, vector<16x128xf32>
      %c0_18 = arith.constant 0 : index
      %c0_19 = arith.constant 0 : index
      %26 = vector.load %arg6[%c0_18, %c0_19] : memref<1x128xf32, #tpu.memory_space<vmem>>, vector<1x128xf32>
      %27 = vector.broadcast %26 : vector<1x128xf32> to vector<16x128xf32>
      %28 = arith.addf %25, %27 : vector<16x128xf32>
      %c0_20 = arith.constant 0 : index
      %c0_21 = arith.constant 0 : index
      %29 = vector.load %arg7[%c0_20, %c0_21] : memref<16x128xf32, #tpu.memory_space<vmem>>, vector<16x128xf32>
      tpu.vector_store %arg7[%c0_20, %c0_21], %28 {strides = array<i32>} : memref<16x128xf32, #tpu.memory_space<vmem>>, vector<16x128xf32>,
    } else {
    }
    return
  }
  func.func @transform_0(%arg0: i32, %arg1: i32) -> (i32, i32) {
    %c0_i32 = arith.constant 0 : i32
    %c0_i32_0 = arith.constant 0 : i32
    return %arg0, %c0_i32 : i32, i32
  }
  func.func @transform_1(%arg0: i32, %arg1: i32) -> (i32, i32) {
    %c0_i32 = arith.constant 0 : i32
    %c0_i32_0 = arith.constant 0 : i32
    return %c0_i32, %arg1 : i32, i32
  }
  func.func @transform_2(%arg0: i32, %arg1: i32) -> (i32, i32) {
    %c0_i32 = arith.constant 0 : i32
    %c0_i32_0 = arith.constant 0 : i32
    return %c0_i32, %arg1 : i32, i32
  }
  func.func @transform_3(%arg0: i32, %arg1: i32) -> (i32, i32) {
    %c0_i32 = arith.constant 0 : i32
    %c0_i32_0 = arith.constant 0 : i32
    return %arg1, %c0_i32 : i32, i32
  }
  func.func @transform_4(%arg0: i32, %arg1: i32) -> (i32, i32) {
    %c0_i32 = arith.constant 0 : i32
    %c0_i32_0 = arith.constant 0 : i32
    %c0_i32_1 = arith.constant 0 : i32
    return %c0_i32, %c0_i32_0 : i32, i32
  }
  func.func @transform_5(%arg0: i32, %arg1: i32) -> (i32, i32) {
    %c0_i32 = arith.constant 0 : i32
    %c0_i32_0 = arith.constant 0 : i32
    return %arg0, %c0_i32 : i32, i32
  }
}

</mosaic_0001>

<bundles_post_ra>
// kernel: _fwd.1
= control target key start
LH: loop header
LB: loop body
LE: loop exit
PB: predicated region body
PF: predicated region fallthrough
CT: control target
= control target key end

     0   :  { %10 = vsyncpa [#allocation4], 0  ;;  %s591_s0 = inlined_call_operand.vmem [shape: f32[16,128], index: 0, kind: input, shape index: {}]   ;;  %s592_s1 = inlined_call_operand.hbm [shape: f32[128,128], index: 1, kind: input, shape index: {}]   ;;  %s593_s2 = inlined_call_operand.vmem [shape: f32[1,128], index: 2, kind: input, shape index: {}]   ;;  %s594_s3 = inlined_call_operand.hbm [shape: f32[128,128], index: 3, kind: input, shape index: {}]   ;;  %s595_s4 = inlined_call_operand.vmem [shape: f32[1,128], index: 4, kind: input, shape index: {}]   ;;  %s596_s5 = inlined_call_operand.vmem [shape: f32[16,128], index: 5, kind: output, shape index: {}]  }
   0x1   :  { %11 = vsyncpa [#allocation6], 0  ;;  %s515_s18 = smov [#allocation3]   ;;  %s467_s22 = scalar_lea.hbm %s592_s1, 2048 }
   0x2   :  { %s19_s19 = sshll.u32 %s515_s18, 4  ;;  %p468_p0 = scmp.ne.s32.totalorder %s592_s1, %s467_s22  ;;  %s20_s19 = int_to_ptr.vmem [resolvable:$true] %s19_s19 }
   0x3   :  { %p471_p1 = scmp.lt.u32.totalorder %s467_s22, %s592_s1 }
   0x5   :  { %p473_p2 = pnand %p471_p1, %p468_p0 }
   0x7   :  { %476 = shalt.err (!%p473_p2)
}
   0x8   :  { %s477_s27 = scalar_lea.vmem %s20_s19, 2048  ;;  %p482_p4 = scmp.lt.s32.totalorder %s20_s19, %s20_s19 }
   0x9   :  { %p478_p3 = scmp.ne.s32.totalorder %s20_s19, %s477_s27  ;;  %p483_p5 = scmp.lt.s32.totalorder %s477_s27, %s477_s27 }
   0xb   :  { %p484_p6 = por %p483_p5, %p482_p4 }
   0xd   :  { %p485_p7 = pnand %p484_p6, %p478_p3 }
   0xf   :  { %488 = shalt.err (!%p485_p7)
}
  0x10   :  { %s516_s28 = smov 128   ;;  %s517_s29 = smov 8  }
  0x11   :  { %25 = dma.hbm_to_vmem [thread:$0]  %s592_s1, 2048, %s20_s19, [#allocation4], %s516_s28, %s516_s28, %s517_s29  }
  0x12   :  { %s518_s7 = smov [#allocation5]   ;;  %s489_s11 = scalar_lea.hbm %s594_s3, 2048 }
  0x13   :  { %s33_s8 = sshll.u32 %s518_s7, 4  ;;  %p490_p8 = scmp.ne.s32.totalorder %s594_s3, %s489_s11  ;;  %s34_s8 = int_to_ptr.vmem [resolvable:$true] %s33_s8 }
  0x14   :  { %p493_p9 = scmp.lt.u32.totalorder %s489_s11, %s594_s3 }
  0x16   :  { %p495_p10 = pnand %p493_p9, %p490_p8 }
  0x18   :  { %498 = shalt.err (!%p495_p10)
}
  0x19   :  { %s499_s16 = scalar_lea.vmem %s34_s8, 2048  ;;  %p504_p12 = scmp.lt.s32.totalorder %s34_s8, %s34_s8 }
  0x1a   :  { %p500_p11 = scmp.ne.s32.totalorder %s34_s8, %s499_s16  ;;  %p505_p13 = scmp.lt.s32.totalorder %s499_s16, %s499_s16 }
  0x1c   :  { %p506_p0 = por %p505_p13, %p504_p12 }
  0x1e   :  { %p507_p1 = pnand %p506_p0, %p500_p11 }
  0x20   :  { %510 = shalt.err (!%p507_p1)
}
  0x21   :  { %39 = dma.hbm_to_vmem [thread:$0]  %s594_s3, 2048, %s34_s8, [#allocation6], %s516_s28, %s516_s28, %s517_s29  }
  0x22   :  { %511 = dma.done.wait [#allocation4], 2048  }
  0x23   :  { %512 = vsyncadd [#allocation4], 4294965248 }
  0x24   :  { %513 = dma.done.wait [#allocation6], 2048  }
  0x25   :  { %514 = vsyncadd [#allocation6], 4294965248  ;;  %v50_v0 = vld [vmem:[#allocation3] sm:$0xff]  ;;  %v51_v1 = vld [vmem:[#allocation3 + $0x8] sm:$0xff] }
  0x26   :  { %v52_v2 = vld [vmem:[#allocation3 + $0x10] sm:$0xff]  ;;  %v395_v3 = vpack.c.bf16 %v51_v1, %v50_v0  ;;  %v53_v4 = vld [vmem:[#allocation3 + $0x18] sm:$0xff]  ;;  %v54_v6 = vld [vmem:[#allocation3 + $0x20] sm:$0xff] }
  0x27   :  { %v399_v5 = vpack.c.bf16 %v53_v4, %v52_v2  ;;  %v55_v7 = vld [vmem:[#allocation3 + $0x28] sm:$0xff]  ;;  %v56_v9 = vld [vmem:[#allocation3 + $0x30] sm:$0xff]  ;;  %v57_v10 = vld [vmem:[#allocation3 + $0x38] sm:$0xff] }
  0x28   :  { %396 = vmatprep.subr.bf16.mxu0 %v395_v3  ;;  %v403_v8 = vpack.c.bf16 %v55_v7, %v54_v6  ;;  %v48_v11 = vld [vmem:[%s591_s0] sm:$0xff]  ;;  %v159_v13 = vld [vmem:[#allocation5 + $0x8] sm:$0xff]  ;;  %v160_v14 = vld [vmem:[#allocation5 + $0x10] sm:$0xff]  ;;  %v407_v20 = vpack.c.bf16 %v57_v10, %v56_v9 }
  0x29   :  { %398 = vmatpush3.bf16.msra.mxu0 %v395_v3  ;;  %357 = vmatprep.mubr.f32.mxu0 %v48_v11  ;;  %v158_v12 = vld [vmem:[#allocation5] sm:$0xff]  ;;  %v161_v16 = vld [vmem:[#allocation5 + $0x18] sm:$0xff]  ;;  %v163_v19 = vld [vmem:[#allocation5 + $0x28] sm:$0xff] }
  0x2a   :  { %400 = vmatprep.subr.bf16.mxu0 %v399_v5  ;;  %v427_v15 = vpack.c.bf16 %v159_v13, %v158_v12  ;;  %v431_v17 = vpack.c.bf16 %v161_v16, %v160_v14  ;;  %v162_v18 = vld [vmem:[#allocation5 + $0x20] sm:$0xff]  ;;  %v59_v22 = vld [vmem:[#allocation3 + $0x48] sm:$0xff]  ;;  %v60_v25 = vld [vmem:[#allocation3 + $0x50] sm:$0xff] }
  0x2b   :  { %v58_v21 = vld [vmem:[#allocation3 + $0x40] sm:$0xff]  ;;  %v435_v23 = vpack.c.bf16 %v163_v19, %v162_v18  ;;  %v61_v26 = vld [vmem:[#allocation3 + $0x58] sm:$0xff]  ;;  %v63_v29 = vld [vmem:[#allocation3 + $0x68] sm:$0xff] }
  0x2c   :  { %428 = vmatprep.subr.bf16.mxu1 %v427_v15  ;;  %v411_v24 = vpack.c.bf16 %v59_v22, %v58_v21  ;;  %v415_v27 = vpack.c.bf16 %v61_v26, %v60_v25  ;;  %v62_v28 = vld [vmem:[#allocation3 + $0x60] sm:$0xff]  ;;  %v64_v31 = vld [vmem:[#allocation3 + $0x70] sm:$0xff]  ;;  %v65_v32 = vld [vmem:[#allocation3 + $0x78] sm:$0xff] }
  0x2d   :  { %402 = vmatpush3.bf16.msra.mxu0 %v399_v5  ;;  %430 = vmatpush3.bf16.msra.mxu1 %v427_v15  ;;  %v419_v30 = vpack.c.bf16 %v63_v29, %v62_v28  ;;  %v423_v33 = vpack.c.bf16 %v65_v32, %v64_v31  ;;  %v49_v34 = vld [vmem:[%s591_s0 + $0x8] sm:$0xff]  ;;  %v164_v35 = vld [vmem:[#allocation5 + $0x30] sm:$0xff]  ;;  %v165_v36 = vld [vmem:[#allocation5 + $0x38] sm:$0xff] }
  0x2e   :  { %404 = vmatprep.subr.bf16.mxu0 %v403_v8  ;;  %432 = vmatprep.subr.bf16.mxu1 %v431_v17  ;;  %v439_v37 = vpack.c.bf16 %v165_v36, %v164_v35  ;;  %v166_v38 = vld [vmem:[#allocation5 + $0x40] sm:$0xff]  ;;  %v167_v39 = vld [vmem:[#allocation5 + $0x48] sm:$0xff]  ;;  %v168_v41 = vld [vmem:[#allocation5 + $0x50] sm:$0xff] }
  0x2f   :  { %v443_v40 = vpack.c.bf16 %v167_v39, %v166_v38  ;;  %v169_v42 = vld [vmem:[#allocation5 + $0x58] sm:$0xff]  ;;  %v170_v44 = vld [vmem:[#allocation5 + $0x60] sm:$0xff]  ;;  %v171_v45 = vld [vmem:[#allocation5 + $0x68] sm:$0xff] }
  0x30   :  { %v447_v43 = vpack.c.bf16 %v169_v42, %v168_v41  ;;  %v451_v46 = vpack.c.bf16 %v171_v45, %v170_v44  ;;  %v172_v47 = vld [vmem:[#allocation5 + $0x70] sm:$0xff]  ;;  %v173_v48 = vld [vmem:[#allocation5 + $0x78] sm:$0xff]  ;;  %v287_v50 = vld [vmem:[%s593_s2] ss:$0 sm:$0xff] }
  0x31   :  { %406 = vmatpush3.bf16.msra.mxu0 %v403_v8  ;;  %434 = vmatpush3.bf16.msra.mxu1 %v431_v17  ;;  %v455_v49 = vpack.c.bf16 %v173_v48, %v172_v47  ;;  %v288_v1 = vld [vmem:[%s595_s4] ss:$0 sm:$0xff] }
  0x32   :  { %408 = vmatprep.subr.bf16.mxu0 %v407_v20  ;;  %436 = vmatprep.subr.bf16.mxu1 %v435_v23 }
  0x35   :  { %410 = vmatpush3.bf16.msra.mxu0 %v407_v20  ;;  %438 = vmatpush3.bf16.msra.mxu1 %v435_v23 }
  0x36   :  { %412 = vmatprep.subr.bf16.mxu0 %v411_v24  ;;  %440 = vmatprep.subr.bf16.mxu1 %v439_v37 }
  0x39   :  { %414 = vmatpush3.bf16.msra.mxu0 %v411_v24  ;;  %442 = vmatpush3.bf16.msra.mxu1 %v439_v37 }
  0x3a   :  { %416 = vmatprep.subr.bf16.mxu0 %v415_v27  ;;  %444 = vmatprep.subr.bf16.mxu1 %v443_v40 }
  0x3d   :  { %418 = vmatpush3.bf16.msra.mxu0 %v415_v27  ;;  %446 = vmatpush3.bf16.msra.mxu1 %v443_v40 }
  0x3e   :  { %420 = vmatprep.subr.bf16.mxu0 %v419_v30  ;;  %448 = vmatprep.subr.bf16.mxu1 %v447_v43 }
  0x41   :  { %422 = vmatpush3.bf16.msra.mxu0 %v419_v30  ;;  %450 = vmatpush3.bf16.msra.mxu1 %v447_v43 }
  0x42   :  { %424 = vmatprep.subr.bf16.mxu0 %v423_v33  ;;  %452 = vmatprep.subr.bf16.mxu1 %v451_v46 }
  0x45   :  { %426 = vmatpush3.bf16.msra.mxu0 %v423_v33  ;;  %454 = vmatpush3.bf16.msra.mxu1 %v451_v46 }
  0x46   :  { %456 = vmatprep.subr.bf16.mxu1 %v455_v49 }
  0x48   :  { %358 = vmatmul.mubr.f32.vlgmr.msra.gmra.mrb[0].mxu0 %v49_v34 }
  0x49   :  { %458 = vmatpush3.bf16.msra.mxu1 %v455_v49 }
 0x11b   :  { %v359_v51 = vpop.f32.mrb[0].mxu0 }
 0x11c   :  { %v145_v52 = vadd.f32 %v359_v51, %v287_v50  ;;  %v139_v53 = vpop.f32.mrb[1].mxu0 }
 0x11d   :  { %v140_v54 = vadd.f32 %v287_v50, %v139_v53 }
 0x11e   :  { %v151_v55 = vmul.f32 0.70710677, %v145_v52  ;;  %v149_v62 = vmul.f32 0.5, %v145_v52 }
 0x11f   :  { %v150_v56 = vmul.f32 0.70710677, %v140_v54  ;;  %v148_v60 = vmul.f32 0.5, %v140_v54 }
 0x120   :  { %463 = verf.f32 %v151_v55 }
 0x121   :  { %465 = verf.f32 %v150_v56 }
 0x12a   :  { %v464_v57 = vpop.eup %463 }
 0x12b   :  { %v466_v58 = vpop.eup %465  ;;  %v155_v59 = vadd.f32 1.0, %v464_v57 }
 0x12c   :  { %v154_v61 = vadd.f32 1.0, %v466_v58 }
 0x12d   :  { %v157_v0 = vmul.f32 %v155_v59, %v149_v62 }
 0x12e   :  { %v156_v63 = vmul.f32 %v154_v61, %v148_v60 }
 0x130   :  { %392 = vmatprep.mubr.f32.mxu1 %v156_v63 }
 0x131   :  { %393 = vmatmul.mubr.f32.vlgmr.msra.gmra.mrb[0].mxu1 %v157_v0 }
 0x204   :  { %v394_v2 = vpop.f32.mrb[0].mxu1 }
 0x205   :  { %v278_v3 = vadd.f32 %v394_v2, %v288_v1  ;;  %v240_v4 = vpop.f32.mrb[1].mxu1 }
 0x206   :  { %v277_v5 = vadd.f32 %v288_v1, %v240_v4 }
 0x207   :  { %280 = vst [vmem:[%s596_s5 + $0x8] sm:$0xff] %v278_v3 }
 0x208   :  { %279 = vst [vmem:[%s596_s5] sm:$0xff] %v277_v5 }
 0x209   :  { %285 = vsyncpa [#allocation4], 1 }
 0x20a   :  { %286 = vsyncpa [#allocation6], 1 }

</bundles_post_ra>
